<compile_context>
chip_gen: v6e
topology: v6e:2x2x1
jax: 0.10.0
libtpu: 0.0.40
codegen_flags: <defaults>
</compile_context>

<pallas_src>
import jax
import jax.numpy as jnp
import numpy as np
from jax.experimental import pallas as pl
from jax.experimental.pallas import tpu as pltpu


def _cdiv(a, b):
    return -(-a // b)


def _round_up(a, b):
    return (a + b - 1) // b * b


def _downsample_matmul_kernel(x_ref, w_ref, b_ref, o_ref):
    # x_ref: (1, 9C, TS)  im2col tile; rows = (tap, c_in), cols = flattened
    #                     output pixels (lane-dense, TS % 128 == 0).
    # w_ref: (C, 9C)      folded weights W2[c_out, tap*C + c_in] (VMEM-resident).
    # b_ref: (C, 1)       bias (f32, VMEM-resident).
    # o_ref: (1, C, TS)   output tile, flattened output pixels on lanes.
    acc = jnp.dot(w_ref[...], x_ref[0, :, :],
                  preferred_element_type=jnp.float32)
    o_ref[0, :, :] = (acc + b_ref[...]).astype(o_ref.dtype)


def _pick_tile_spatial(S, C, itemsize, N):
    """Lane tile (multiple of 128) over the flattened output-spatial dim."""
    S128 = _round_up(S, 128)
    Kp = _round_up(9 * C, 8)          # sublane-padded contraction depth
    Cp = _round_up(C, 8)              # sublane-padded output channels
    # ~40 MiB working set: double-buffered x/o blocks + (possibly
    # double-buffered) resident weights; leaves headroom under v7x's 64 MiB/TC.
    budget = 40 << 20
    w_bytes = 2 * Cp * _round_up(9 * C, 128) * itemsize
    per_lane = 2 * (Kp + Cp) * itemsize
    ts = max(budget - w_bytes, 128 * per_lane) // per_lane
    ts = (ts // 128) * 128
    ts = max(128, min(int(ts), 64 * 1024, S128))
    if N == 1 and S128 >= 256:
        # v7x shards "parallel" grid axes across its 2 TensorCores; make sure
        # there are >= 2 grid steps when the image is big enough to split.
        ts = min(ts, _round_up(_cdiv(S, 2), 128))
    return int(ts)


def downsample(x_nchw, weight, bias, *, tile_spatial=None):
    """PyTorch-equivalent forward: Conv2d(C, C, k=3, stride=2, padding=1).

    x_nchw: (N, C, H, W), weight: (C, C, 3, 3) [OIHW], bias: (C,).
    Returns (N, C, ceil(H/2), ceil(W/2)) in NCHW.
    """
    N, C, H, W = x_nchw.shape
    Ho = (H - 1) // 2 + 1
    Wo = (W - 1) // 2 + 1
    S = Ho * Wo

    # Zero-pad: 1 on top/left (PyTorch padding=1); bottom/right only as much
    # as the strided taps actually read (padded size = 2*Ho+1 x 2*Wo+1).
    pad_b = 2 * Ho - H
    pad_r = 2 * Wo - W
    x_pad = jnp.pad(x_nchw, ((0, 0), (0, 0), (1, pad_b), (1, pad_r)))

    # im2col: X[n, (kh*3+kw)*C + ci, ho*Wo + wo] = x_pad[n, ci, 2*ho+kh, 2*wo+kw]
    # Built as 9 strided slices + one concat; XLA fuses pad+slice+concat into
    # a single pass producing the kernel's (already lane-friendly) operand.
    cols = []
    for kh in range(3):
        for kw in range(3):
            cols.append(x_pad[:, :, kh:kh + 2 * Ho:2, kw:kw + 2 * Wo:2])
    xim = jnp.stack(cols, axis=1).reshape(N, 9 * C, S)

    itemsize = jnp.dtype(x_nchw.dtype).itemsize
    TS = (int(tile_spatial) if tile_spatial is not None
          else _pick_tile_spatial(S, C, itemsize, N))
    S_pad = _cdiv(S, TS) * TS
    if S_pad != S:
        # Pad flattened spatial to a multiple of the lane tile -> unmasked,
        # full-width stores in the kernel.  Padded columns are zeros (they
        # produce bias-only outputs that are sliced away below).
        xim = jnp.pad(xim, ((0, 0), (0, 0), (0, S_pad - S)))
    n_ts = S_pad // TS

    # (C_out, C_in, 3, 3) [OIHW] -> (C_out, 9*C_in), K index = (kh*3+kw)*C + ci.
    w2 = jnp.transpose(weight, (0, 2, 3, 1)).reshape(C, 9 * C).astype(x_nchw.dtype)
    b2 = bias.reshape(C, 1).astype(jnp.float32)

    # VMEM budget from the actual (8,128)-padded block sizes; 56 MiB cap keeps
    # headroom on v7x (64 MiB/TC), 32 MiB floor matches the default elsewhere.
    Kp = _round_up(9 * C, 8)
    Cp = _round_up(C, 8)
    x_blk = Kp * TS * itemsize
    o_blk = Cp * TS * itemsize
    w_blk = Cp * _round_up(9 * C, 128) * itemsize
    b_blk = Cp * 128 * 4
    vmem_limit = int(min(max(2 * (x_blk + o_blk) + 2 * (w_blk + b_blk) + (2 << 20),
                             32 << 20),
                         56 << 20))

    out_flat = pl.pallas_call(
        _downsample_matmul_kernel,
        out_shape=jax.ShapeDtypeStruct((N, C, S_pad), x_nchw.dtype),
        grid_spec=pltpu.PrefetchScalarGridSpec(
            num_scalar_prefetch=0,
            grid=(N, n_ts),
            in_specs=[
                pl.BlockSpec((1, 9 * C, TS), lambda n, t: (n, 0, t)),
                # Constant index maps -> weights/bias stay resident in VMEM.
                pl.BlockSpec((C, 9 * C), lambda n, t: (0, 0)),
                pl.BlockSpec((C, 1), lambda n, t: (0, 0)),
            ],
            out_specs=pl.BlockSpec((1, C, TS), lambda n, t: (n, 0, t)),
        ),
        compiler_params=pltpu.CompilerParams(
            dimension_semantics=("parallel", "parallel"),
            vmem_limit_bytes=vmem_limit),
    )(xim, w2, b2)

    # (N, C, S_pad) -> drop the spatial padding -> free reshape to NCHW.
    return out_flat[:, :, :S].reshape(N, C, Ho, Wo)


if __name__ == "__main__":
    key = jax.random.PRNGKey(0)
    kw_key, kb_key, kx1, kx2 = jax.random.split(key, 4)

    N, C = 2, 4
    # Deterministic Conv2d-style init (uniform in +/- 1/sqrt(fan_in)).
    fan_in = C * 3 * 3
    bound = 1.0 / np.sqrt(fan_in)
    weight = jax.random.uniform(kw_key, (C, C, 3, 3), dtype=jnp.float32,
                                minval=-bound, maxval=bound)
    bias = jax.random.uniform(kb_key, (C,), dtype=jnp.float32,
                              minval=-bound, maxval=bound)

    def ref_conv(x):
        return jax.lax.conv_general_dilated(
            x, weight, window_strides=(2, 2), padding=((1, 1), (1, 1)),
            dimension_numbers=("NCHW", "OIHW", "NCHW"),
        ) + bias[None, :, None, None]

    # Even spatial size (the original test) + an odd / non-tile-divisible case.
    for (H, W), kx in (((16, 16), kx1), ((13, 15), kx2)):
        x = jax.random.normal(kx, (N, C, H, W), dtype=jnp.float32)
        out = jax.block_until_ready(downsample(x, weight, bias))
        ref = ref_conv(x)
        assert out.shape == ref.shape, (out.shape, ref.shape)
        np.testing.assert_allclose(np.asarray(out), np.asarray(ref),
                                   rtol=1e-5, atol=1e-5)

    print("KERNEL_OK")
</pallas_src>

<mosaic_0001>
module attributes {stable_mosaic.version = 11 : i64} {
  func.func @_downsample_matmul_kernel(%arg0: i32, %arg1: i32, %arg2: memref<1x36x128xf32, #tpu.memory_space<vmem>>, %arg3: memref<4x36xf32, #tpu.memory_space<vmem>>, %arg4: memref<4x1xf32, #tpu.memory_space<vmem>>, %arg5: memref<1x4x128xf32, #tpu.memory_space<vmem>>) attributes {dimension_semantics = [#tpu.dimension_semantics<parallel>, #tpu.dimension_semantics<parallel>], iteration_bounds = array<i64: 2, 1>, scalar_prefetch = 0 : i64, scratch_operands = 0 : i64, tpu.core_type = #tpu.core_type<tc>, window_params = [{transform_indices = @transform_0, window_bounds = array<i64: 1, 36, 128>}, {pipeline_mode = #tpu.pipeline_mode<synchronous>, transform_indices = @transform_1, window_bounds = array<i64: 4, 36>}, {pipeline_mode = #tpu.pipeline_mode<synchronous>, transform_indices = @transform_2, window_bounds = array<i64: 4, 1>}, {transform_indices = @transform_3, window_bounds = array<i64: 1, 4, 128>}]} {
    %c0 = arith.constant 0 : index
    %c0_0 = arith.constant 0 : index
    %0 = vector.load %arg3[%c0, %c0_0] : memref<4x36xf32, #tpu.memory_space<vmem>>, vector<4x36xf32>
    %c0_1 = arith.constant 0 : index
    %c0_2 = arith.constant 0 : index
    %c0_3 = arith.constant 0 : index
    %1 = vector.load %arg2[%c0_1, %c0_2, %c0_3] : memref<1x36x128xf32, #tpu.memory_space<vmem>>, vector<1x36x128xf32>
    %2 = vector.shape_cast %1 : vector<1x36x128xf32> to vector<36x128xf32>
    %cst = arith.constant dense<0.000000e+00> : vector<4x128xf32>
    %3 = tpu.matmul %0, %2, %cst {dimension_numbers = #tpu.dot_dimension_numbers<[1], [0], [0], [1], [0, 0, 1, 1], [], []>} : vector<4x36xf32>, vector<36x128xf32>, vector<4x128xf32> -> vector<4x128xf32>
    %c0_4 = arith.constant 0 : index
    %c0_5 = arith.constant 0 : index
    %4 = vector.load %arg4[%c0_4, %c0_5] : memref<4x1xf32, #tpu.memory_space<vmem>>, vector<4x1xf32>
    %5 = vector.broadcast %4 : vector<4x1xf32> to vector<4x128xf32>
    %6 = arith.addf %3, %5 : vector<4x128xf32>
    %c0_6 = arith.constant 0 : index
    %c0_7 = arith.constant 0 : index
    %c0_8 = arith.constant 0 : index
    %7 = vector.load %arg5[%c0_6, %c0_7, %c0_8] : memref<1x4x128xf32, #tpu.memory_space<vmem>>, vector<1x4x128xf32>
    %8 = vector.shape_cast %7 : vector<1x4x128xf32> to vector<4x128xf32>
    %9 = vector.shape_cast %6 : vector<4x128xf32> to vector<1x4x128xf32>
    tpu.vector_store %arg5[%c0_6, %c0_7, %c0_8], %9 {strides = array<i32>} : memref<1x4x128xf32, #tpu.memory_space<vmem>>, vector<1x4x128xf32>,
    return
  }
  func.func @transform_0(%arg0: i32, %arg1: i32) -> (i32, i32, i32) {
    %c0_i32 = arith.constant 0 : i32
    %c0_i32_0 = arith.constant 0 : i32
    return %arg0, %c0_i32, %arg1 : i32, i32, i32
  }
  func.func @transform_1(%arg0: i32, %arg1: i32) -> (i32, i32) {
    %c0_i32 = arith.constant 0 : i32
    %c0_i32_0 = arith.constant 0 : i32
    %c0_i32_1 = arith.constant 0 : i32
    return %c0_i32, %c0_i32_0 : i32, i32
  }
  func.func @transform_2(%arg0: i32, %arg1: i32) -> (i32, i32) {
    %c0_i32 = arith.constant 0 : i32
    %c0_i32_0 = arith.constant 0 : i32
    %c0_i32_1 = arith.constant 0 : i32
    return %c0_i32, %c0_i32_0 : i32, i32
  }
  func.func @transform_3(%arg0: i32, %arg1: i32) -> (i32, i32, i32) {
    %c0_i32 = arith.constant 0 : i32
    %c0_i32_0 = arith.constant 0 : i32
    return %arg0, %c0_i32, %arg1 : i32, i32, i32
  }
}

</mosaic_0001>

<bundles_post_ra>
// kernel: tpu_custom_call.1
= control target key start
LH: loop header
LB: loop body
LE: loop exit
PB: predicated region body
PF: predicated region fallthrough
CT: control target
= control target key end

     0   :  { %8 = vsyncpa [#allocation3], 0  ;;  %s679_s0 = inlined_call_operand.vmem [shape: f32[2,36,128], index: 0, kind: input, shape index: {}]   ;;  %s680_s1 = inlined_call_operand.vmem [shape: f32[4,36], index: 1, kind: input, shape index: {}]   ;;  %s681_s2 = inlined_call_operand.vmem [shape: f32[4,1], index: 2, kind: input, shape index: {}]   ;;  %s682_s3 = inlined_call_operand.hbm [shape: f32[2,4,128], index: 3, kind: output, shape index: {}]  }
   0x1   :  { %10 = vsyncpa [#allocation3 + $0x1], 0  ;;  %s568_s12 = smov 0   ;;  %s570_s13 = smov 0  }
   0x2   :  { %s572_s14 = smov 0   ;;  %s574_s15 = smov 0  }
   0x3   :  { %s576_s16 = smov 0   ;;  %s578_s17 = smov 0  }
   0x4 LB: > { %s374_s18 = sadd.s32 4294967295, %s542_s17   ;;  %s375_s19 = sadd.s32 4294967294, %s542_s17   ;;  %s542_s17 = sphi %s578_s17, %s16_s17   ;;  %s538_s16 = sphi %s576_s16, %s689_s16   ;;  %s534_s15 = sphi %s574_s15, %s688_s15   ;;  %s530_s14 = sphi %s572_s14, %s687_s14   ;;  %s526_s13 = sphi %s570_s13, %s686_s13   ;;  %s522_s12 = sphi %s568_s12, %s685_s12  }
   0x5   : > { %s28_s20 = sadd.s32 1, %s538_s16  ;;  %s107_s21 = sadd.s32 1, %s530_s14 }
   0x6   : > { %p30_p0 = scmp.ge.s32.totalorder %s28_s20, 2  ;;  %p117_p1 = scmp.ne.s32.totalorder %s530_s14, %s526_s13 }
   0x7   : > { %p118_p2 = scmp.eq.s32.totalorder %s374_s18, 1  ;;  %p123_p3 = scmp.ne.s32.totalorder %s526_s13, %s522_s12 }
   0x8   : > { %s691_s20 = smov (%p30_p0, %s28_s20), 0  ;;  %p124_p5 = scmp.eq.s32.totalorder %s375_s19, 1 }
   0x9   : > { %p608_p4 = por %p118_p2, %p117_p1  ;;  %s102_s23 = ssub.s32 %s538_s16, %s691_s20 }
   0xa   : > { %p378_p6 = scmp.ge.s32.totalorder %s542_s17, 1  ;;  %p105_p7 = scmp.eq.s32.totalorder %s102_s23, 0 }
   0xb   : > { %p615_p8 = por %p124_p5, %p123_p3  ;;  %p159_p9 = scmp.lt.s32.totalorder %s542_s17, 3 }
   0xc   : > { %s621_s25 = scalar_select %p105_p7, %s530_s14, %s107_s21  }
   0xd   : > { %p160_p10 = pnand %p378_p6, %p159_p9 }
   0xe   : > { %p186_p11 = scmp.lt.s32.totalorder (!%p160_p10), %s534_s15, 1  ;;  %s183_s8 = sand.u32 (!%p160_p10), 1, %s526_s13  }
   0xf   : > { %163 = sbr.rel (%p160_p10) target bundleno = 243 (0xf3), region = 32  ;;  %s379_s9 = sshll.u32 (!%p160_p10), %s183_s8, 2 }
  0x10   : > { %s384_s10 = sshll.u32 (!%p160_p10), %s534_s15, 6  ;;  %s185_s11 = scalar_lea.vmem (!%p160_p10), [#allocation2], %s379_s9 }
  0x11   : > { %s300_s18 = sshll.u32 (!%p160_p10), %s185_s11, 4  ;;  %s639_s23 = scalar_lea.hbm (!%p160_p10), %s682_s3, %s384_s10  ;;  %s301_s18 = int_to_ptr.vmem [resolvable:$true] %s300_s18 }
  0x12   : > { %s286_s26 = scalar_lea.sflag (!%p160_p10), [#allocation3], %s183_s8  ;;  %s466_s27 = scalar_lea.vmem (!%p160_p10), %s301_s18, 64 }
  0x13   : > { %p467_p12 = scmp.ne.s32.totalorder (!%p160_p10), %s301_s18, %s466_s27 }
  0x14   : > { %v544_v0 = vmov 0.0   ;;  %vm545_vm0 = vmmov 0   ;;  %v200_v1 = vld [vmem:[%s681_s2] sm:$0xf]  ;;  %s187_s28 = scalar_select %p186_p11, %s534_s15, 1  ;;  %v546_v2 = vmov 0  }
  0x15   : > { %393 = vmatprep.subr.mxu0 %v544_v0  ;;  %403 = vmatprep.mubr.msk.f32.mxu0 %vm545_vm0, %v544_v0  ;;  %vm210_vm1 = vcmask 1043456   ;;  %v194_v8 = vld [vmem:[%s680_s1] sm:$0xf]  ;;  %vm206_vm2 = vcmask 293888   ;;  %p468_p13 = pnand %p467_p12, %p608_p4 }
  0x16   : > { %465 = vset.pattern.permute.xlu0 %v546_v2  ;;  %s406_s29 = smul.u32 40, %s187_s28  ;;  %s547_s28 = smov [#allocation2]  }
  0x17   : > { %203 = vperm.xlu0 %465, %v200_v1   ;;  %p469_p0 = pneg %p468_p13  ;;  %s470_s15 = sshll.u32 %s547_s28, 4  ;;  %s471_s15 = int_to_ptr.vmem [resolvable:$false] %s470_s15 }
  0x18   : > { %s193_s5 = scalar_lea.vmem %s679_s0, %s406_s29  ;;  %s472_s29 = scalar_lea.vmem %s471_s15, 128 }
  0x19   : > { %v199_v3 = vld [vmem:[%s193_s5 + $0x20] sm:$0xf]  ;;  %v198_v4 = vld [vmem:[%s193_s5 + $0x18] sm:$0xff]  ;;  %v197_v5 = vld [vmem:[%s193_s5 + $0x10] sm:$0xff]  ;;  %p473_p1 = scmp.lt.s32.totalorder %s301_s18, %s471_s15  ;;  %p474_p2 = scmp.lt.s32.totalorder %s472_s29, %s466_s27 }
  0x1a   : > { %394 = vmatpush3.msk.msra.mxu0 %vm210_vm1, %v199_v3  ;;  %v196_v6 = vld [vmem:[%s193_s5 + $0x8] sm:$0xff]  ;;  %v195_v7 = vld [vmem:[%s193_s5] sm:$0xff] }
  0x1b   : > { %395 = vmatprep.subr.mxu0 %v544_v0  ;;  %p475_p3 = por %p474_p2, %p473_p1 }
  0x1c   : > { %396 = vmatpush3.msra.mxu0 %v198_v4 }
  0x1d   : > { %397 = vmatprep.subr.mxu0 %v544_v0  ;;  %p476_p5 = pnand %p475_p3, %p469_p0 }
  0x1e   : > { %398 = vmatpush3.msra.mxu0 %v197_v5 }
  0x1f   : > { %399 = vmatprep.subr.mxu0 %v544_v0 }
  0x20   : > { %400 = vmatpush3.msra.mxu0 %v196_v6 }
  0x21   : > { %401 = vmatprep.subr.mxu0 %v544_v0 }
  0x22   : > { %402 = vmatpush3.msra.mxu0 %v195_v7 }
  0x23   : > { %404 = vmatmul.mubr.msk.f32.vlgmr.msra.gmra.mxu0 %vm206_vm2, %v194_v8 }
  0x92   : > { %v204_v9 = vpop.permute.xlu0 %203 }
  0xe3   : > { %v280_v10 = vpop.f32.mrf.mxu0 }
  0xe4   : > { %v281_v11 = vadd.f32 %v280_v10, %v204_v9 }
  0xe5   : > { %v405_v12 = vpop.f32.mrf.mxu0 }
  0xe6   : > { %284 = vst [vmem:[%s185_s11] sm:$0xf] %v281_v11 }
  0xe7   : > { %479 = shalt.err (!%p476_p5)
}
  0xe8   : > { %s480_s30 = scalar_lea.hbm %s639_s23, 64  ;;  %s484_s6 = scalar_lea.hbm %s682_s3, 128 }
  0xe9   : > { %p481_p6 = scmp.ne.s32.totalorder %s639_s23, %s480_s30  ;;  %p485_p10 = scmp.lt.s32.totalorder %s639_s23, %s682_s3 }
  0xea   : > { %p486_p11 = scmp.lt.s32.totalorder %s484_s6, %s480_s30 }
  0xeb   : > { %p482_p7 = pnand %p481_p6, %p608_p4 }
  0xec   : > { %p487_p12 = por %p486_p11, %p485_p10 }
  0xed   : > { %p483_p9 = pneg %p482_p7 }
  0xef   : > { %p488_p13 = pnand %p487_p12, %p483_p9 }
  0xf1   : > { %491 = shalt.err (!%p488_p13)
}
  0xf2   : > { %407 = dma.vmem_to_hbm [thread:$0]  (%p608_p4), %s301_s18, 64, %s639_s23, %s286_s26  }
  0xf3 PF: > { %p413_p0 = scmp.ge.s32.totalorder %s542_s17, 2  ;;  %s312_s9 = sand.u32 1, %s522_s12  }
  0xf4   : > { %s313_s10 = scalar_lea.sflag [#allocation3], %s312_s9 }
  0xf5   : > { %p410_p1 = pnand %p413_p0, %p615_p8 }
  0xf7   : > { %p411_p2 = pneg %p410_p1 }
  0xf9   : > { %517 = dma.done.wait (%p411_p2), %s313_s10, 64  }
  0xfa   : > { %519 = vsyncadd (%p411_p2), %s313_s10, 4294967232  ;;  %s16_s17 = sadd.s32 1, %s542_s17   ;;  %s685_s12 = smov %s526_s13 }
  0xfb   : > { %p13_p3 = scmp.ge.s32.totalorder %s16_s17, 4   ;;  %s686_s13 = smov %s530_s14 }
  0xfc   : > { %s687_s14 = smov %s621_s25  ;;  %s688_s15 = smov %s538_s16 }
  0xfd   : > { %s689_s16 = smov %s691_s20  ;;  %15 = sbr.rel (!%p13_p3) target bundleno = 4 (0x4), region = 67 }
 0x102   :  { %318 = vsyncpa [#allocation3], 1 }
 0x103   :  { %320 = vsyncpa [#allocation3 + $0x1], 1 }

</bundles_post_ra>
